<compile_context>
chip_gen: v5e
topology: v5e:2x2
jax: 0.10.0
libtpu: 0.0.40
codegen_flags: <defaults>
</compile_context>

<pallas_src>
import functools

import jax
import jax.numpy as jnp
from jax.experimental import pallas as pl
from jax.experimental.pallas import tpu as pltpu


def _round_up(x, m):
    return ((x + m - 1) // m) * m


def _cbl_kernel(p_ref, w_ref, scale_ref, shift_ref, o_ref, *, neg_slope):
    """out[c, m] = leaky_relu( scale[c] * (W @ patch)[c, m] + shift[c] ).

    p_ref:     (1, Kp, TM)   bf16  im2col patch tile (lane-dense TM)
    w_ref:     (Cout, Kp)    bf16  conv weight (unscaled), K zero-padded
    scale_ref: (Cout, 1)     f32   BN scale  = gamma / sqrt(var + eps)
    shift_ref: (Cout, 1)     f32   BN shift  = beta - mean * scale
    o_ref:     (1, Cout, TM) bf16  channel-major output tile (lane-dense TM)
    """
    y = jax.lax.dot_general(
        w_ref[...], p_ref[0, :, :],
        dimension_numbers=(((1,), (0,)), ((), ())),
        preferred_element_type=jnp.float32)           # (Cout, TM) f32 accumulate
    y = y * scale_ref[...] + shift_ref[...]           # BN as f32 affine
    y = jnp.where(y >= 0, y, neg_slope * y)           # LeakyReLU(0.1)
    o_ref[0, :, :] = y.astype(o_ref.dtype)


def cbl_block(x_nchw, weight_oihw, gamma, beta, running_mean, running_var,
              *, stride=1, eps=1e-5, neg_slope=0.1, out_dtype=jnp.bfloat16):
    n, c_in, h, w = x_nchw.shape
    c_out, c_in_w, kh_sz, kw_sz = weight_oihw.shape
    assert c_in == c_in_w
    pad_h = (kh_sz - 1) // 2
    pad_w = (kw_sz - 1) // 2
    h_out = (h + 2 * pad_h - kh_sz) // stride + 1
    w_out = (w + 2 * pad_w - kw_sz) // stride + 1
    m = h_out * w_out
    kdim = kh_sz * kw_sz * c_in
    kdim_pad = _round_up(kdim, 16)            # bf16 sublane packing

    # ---- BN affine kept in f32 (applied in-kernel after f32 accumulation) -----
    scale = gamma.astype(jnp.float32) / jnp.sqrt(
        running_var.astype(jnp.float32) + eps)                      # (Cout,)
    shift = beta.astype(jnp.float32) - running_mean.astype(jnp.float32) * scale
    scale = scale.reshape(c_out, 1)
    shift = shift.reshape(c_out, 1)

    # ---- weight: OIHW -> (Cout, KH*KW*Cin), cin fastest; bf16, K zero-padded ---
    w2 = jnp.transpose(weight_oihw, (0, 2, 3, 1)).reshape(c_out, kdim)
    w2 = jnp.pad(w2, ((0, 0), (0, kdim_pad - kdim))).astype(jnp.bfloat16)

    # ---- glue im2col directly in NCHW, in bf16, no transposes -----------------
    x_bf = x_nchw.astype(jnp.bfloat16)
    xp = jnp.pad(x_bf, ((0, 0), (0, 0), (pad_h, pad_h), (pad_w, pad_w)))
    taps = []
    for dkh in range(kh_sz):
        for dkw in range(kw_sz):
            taps.append(xp[:, :, dkh: dkh + (h_out - 1) * stride + 1: stride,
                               dkw: dkw + (w_out - 1) * stride + 1: stride])
    patches = jnp.stack(taps, axis=1)                 # (N, KH*KW, Cin, Ho, Wo)
    patch_t = patches.reshape(n, kdim, m)             # (N, K, M) (kh,kw,cin) order

    # ---- tile selection: lane-dense TM from a VMEM budget ---------------------
    m_pad = _round_up(m, 128)
    out_bytes = jnp.dtype(out_dtype).itemsize
    # double-buffered patch block + double-buffered out block, per lane-column:
    per_lane_bytes = 2 * (kdim_pad * 2) + 2 * (c_out * out_bytes)
    vmem_budget = 16 * 1024 * 1024                    # safe for v7x 32 MiB scoped
    tm_cap = max(128, (vmem_budget // per_lane_bytes) // 128 * 128)
    tm = 128
    q = m_pad // 128
    for cand in range(q, 0, -1):                      # largest 128-multiple divisor
        if q % cand == 0 and 128 * cand <= tm_cap:
            tm = 128 * cand
            break
    # keep at least 2 parallel grid steps (v7x has 2 TensorCores per chip)
    while n * (m_pad // tm) < 2 and tm >= 256:
        tm //= 2

    patch_t = jnp.pad(patch_t,
                      ((0, 0), (0, kdim_pad - kdim), (0, m_pad - m)))

    kernel = functools.partial(_cbl_kernel, neg_slope=neg_slope)

    out = pl.pallas_call(
        kernel,
        out_shape=jax.ShapeDtypeStruct((n, c_out, m_pad), out_dtype),
        grid_spec=pltpu.PrefetchScalarGridSpec(
            num_scalar_prefetch=0,
            grid=(n, m_pad // tm),
            in_specs=[
                pl.BlockSpec((1, kdim_pad, tm), lambda b, i: (b, 0, i)),
                pl.BlockSpec((c_out, kdim_pad), lambda b, i: (0, 0)),
                pl.BlockSpec((c_out, 1), lambda b, i: (0, 0)),
                pl.BlockSpec((c_out, 1), lambda b, i: (0, 0)),
            ],
            out_specs=pl.BlockSpec((1, c_out, tm), lambda b, i: (b, 0, i)),
        ),
        compiler_params=pltpu.CompilerParams(
            dimension_semantics=("parallel", "parallel"),
            vmem_limit_bytes=32 * 1024 * 1024),
    )(patch_t, w2, scale, shift)

    # Channel-major output: back to NCHW is a pure reshape (no transpose).
    return out[:, :, :m].reshape(n, c_out, h_out, w_out)


def _reference(x_nchw, weight_oihw, gamma, beta, running_mean, running_var,
               *, stride, eps=1e-5, neg_slope=0.1):
    kh_sz, kw_sz = weight_oihw.shape[2], weight_oihw.shape[3]
    pad_h, pad_w = (kh_sz - 1) // 2, (kw_sz - 1) // 2
    y = jax.lax.conv_general_dilated(
        x_nchw, weight_oihw, window_strides=(stride, stride),
        padding=[(pad_h, pad_h), (pad_w, pad_w)],
        dimension_numbers=("NCHW", "OIHW", "NCHW"))
    y = (y - running_mean[None, :, None, None]) / \
        jnp.sqrt(running_var[None, :, None, None] + eps)
    y = y * gamma[None, :, None, None] + beta[None, :, None, None]
    return jnp.where(y >= 0, y, neg_slope * y)


if __name__ == "__main__":
    key = jax.random.PRNGKey(0)
    configs = [
        # (N, Cin, H, W, Cout, K, stride)
        (2, 4, 16, 16, 8, 3, 1),
        (2, 4, 16, 16, 16, 3, 2),
    ]
    for (N, Cin, H, W, Cout, K, STRIDE) in configs:
        key, k1, k2, k3, k4, k5, k6 = jax.random.split(key, 7)
        x = jax.random.normal(k1, (N, Cin, H, W), jnp.float32)
        weight = 0.1 * jax.random.normal(k2, (Cout, Cin, K, K), jnp.float32)
        gamma = 1.0 + 0.1 * jax.random.normal(k3, (Cout,), jnp.float32)
        beta = 0.1 * jax.random.normal(k4, (Cout,), jnp.float32)
        running_mean = 0.1 * jax.random.normal(k5, (Cout,), jnp.float32)
        running_var = jnp.abs(jax.random.normal(k6, (Cout,), jnp.float32)) + 0.5

        out = jax.block_until_ready(
            cbl_block(x, weight, gamma, beta, running_mean, running_var,
                      stride=STRIDE))
        ref = _reference(x, weight, gamma, beta, running_mean, running_var,
                         stride=STRIDE)

        pad = (K - 1) // 2
        h_out = (H + 2 * pad - K) // STRIDE + 1
        w_out = (W + 2 * pad - K) // STRIDE + 1
        assert out.shape == (N, Cout, h_out, w_out), out.shape
        out_f32 = out.astype(jnp.float32)
        # Tolerance accounts for bf16 MXU inputs / bf16 output (f32 accumulation).
        err = float(jnp.max(jnp.abs(out_f32 - ref)))
        assert jnp.allclose(out_f32, ref, atol=2e-2, rtol=2e-2), err

    print("KERNEL_OK")
</pallas_src>

<mosaic_0001>
module attributes {stable_mosaic.version = 11 : i64} {
  func.func @_cbl_kernel(%arg0: i32, %arg1: i32, %arg2: memref<1x48x256xbf16, #tpu.memory_space<vmem>>, %arg3: memref<8x48xbf16, #tpu.memory_space<vmem>>, %arg4: memref<8x1xf32, #tpu.memory_space<vmem>>, %arg5: memref<8x1xf32, #tpu.memory_space<vmem>>, %arg6: memref<1x8x256xbf16, #tpu.memory_space<vmem>>) attributes {dimension_semantics = [#tpu.dimension_semantics<parallel>, #tpu.dimension_semantics<parallel>], iteration_bounds = array<i64: 2, 1>, scalar_prefetch = 0 : i64, scratch_operands = 0 : i64, tpu.core_type = #tpu.core_type<tc>, window_params = [{transform_indices = @transform_0, window_bounds = array<i64: 1, 48, 256>}, {pipeline_mode = #tpu.pipeline_mode<synchronous>, transform_indices = @transform_1, window_bounds = array<i64: 8, 48>}, {pipeline_mode = #tpu.pipeline_mode<synchronous>, transform_indices = @transform_2, window_bounds = array<i64: 8, 1>}, {pipeline_mode = #tpu.pipeline_mode<synchronous>, transform_indices = @transform_3, window_bounds = array<i64: 8, 1>}, {transform_indices = @transform_4, window_bounds = array<i64: 1, 8, 256>}]} {
    %c0 = arith.constant 0 : index
    %c0_0 = arith.constant 0 : index
    %0 = vector.load %arg3[%c0, %c0_0] : memref<8x48xbf16, #tpu.memory_space<vmem>>, vector<8x48xbf16>
    %c0_1 = arith.constant 0 : index
    %c0_2 = arith.constant 0 : index
    %c0_3 = arith.constant 0 : index
    %1 = vector.load %arg2[%c0_1, %c0_2, %c0_3] : memref<1x48x256xbf16, #tpu.memory_space<vmem>>, vector<1x48x256xbf16>
    %2 = vector.shape_cast %1 : vector<1x48x256xbf16> to vector<48x256xbf16>
    %cst = arith.constant dense<0.000000e+00> : vector<8x256xf32>
    %3 = tpu.matmul %0, %2, %cst {dimension_numbers = #tpu.dot_dimension_numbers<[1], [0], [0], [1], [0, 0, 1, 1], [], []>} : vector<8x48xbf16>, vector<48x256xbf16>, vector<8x256xf32> -> vector<8x256xf32>
    %c0_4 = arith.constant 0 : index
    %c0_5 = arith.constant 0 : index
    %4 = vector.load %arg4[%c0_4, %c0_5] : memref<8x1xf32, #tpu.memory_space<vmem>>, vector<8x1xf32>
    %5 = vector.broadcast %4 : vector<8x1xf32> to vector<8x256xf32>
    %6 = arith.mulf %3, %5 : vector<8x256xf32>
    %c0_6 = arith.constant 0 : index
    %c0_7 = arith.constant 0 : index
    %7 = vector.load %arg5[%c0_6, %c0_7] : memref<8x1xf32, #tpu.memory_space<vmem>>, vector<8x1xf32>
    %8 = vector.broadcast %7 : vector<8x1xf32> to vector<8x256xf32>
    %9 = arith.addf %6, %8 : vector<8x256xf32>
    %cst_8 = arith.constant 0.000000e+00 : f32
    %10 = vector.broadcast %cst_8 : f32 to vector<8x256xf32>
    %11 = arith.cmpf oge, %9, %10 : vector<8x256xf32>
    %cst_9 = arith.constant 1.000000e-01 : f32
    %12 = vector.broadcast %cst_9 : f32 to vector<8x256xf32>
    %13 = arith.mulf %12, %9 : vector<8x256xf32>
    %14 = arith.select %11, %9, %13 : vector<8x256xi1>, vector<8x256xf32>
    %15 = arith.truncf %14 : vector<8x256xf32> to vector<8x256xbf16>
    %c0_10 = arith.constant 0 : index
    %c0_11 = arith.constant 0 : index
    %c0_12 = arith.constant 0 : index
    %16 = vector.load %arg6[%c0_10, %c0_11, %c0_12] : memref<1x8x256xbf16, #tpu.memory_space<vmem>>, vector<1x8x256xbf16>
    %17 = vector.shape_cast %16 : vector<1x8x256xbf16> to vector<8x256xbf16>
    %18 = vector.shape_cast %15 : vector<8x256xbf16> to vector<1x8x256xbf16>
    tpu.vector_store %arg6[%c0_10, %c0_11, %c0_12], %18 {strides = array<i32>} : memref<1x8x256xbf16, #tpu.memory_space<vmem>>, vector<1x8x256xbf16>,
    return
  }
  func.func @transform_0(%arg0: i32, %arg1: i32) -> (i32, i32, i32) {
    %c0_i32 = arith.constant 0 : i32
    %c0_i32_0 = arith.constant 0 : i32
    return %arg0, %c0_i32, %arg1 : i32, i32, i32
  }
  func.func @transform_1(%arg0: i32, %arg1: i32) -> (i32, i32) {
    %c0_i32 = arith.constant 0 : i32
    %c0_i32_0 = arith.constant 0 : i32
    %c0_i32_1 = arith.constant 0 : i32
    return %c0_i32, %c0_i32_0 : i32, i32
  }
  func.func @transform_2(%arg0: i32, %arg1: i32) -> (i32, i32) {
    %c0_i32 = arith.constant 0 : i32
    %c0_i32_0 = arith.constant 0 : i32
    %c0_i32_1 = arith.constant 0 : i32
    return %c0_i32, %c0_i32_0 : i32, i32
  }
  func.func @transform_3(%arg0: i32, %arg1: i32) -> (i32, i32) {
    %c0_i32 = arith.constant 0 : i32
    %c0_i32_0 = arith.constant 0 : i32
    %c0_i32_1 = arith.constant 0 : i32
    return %c0_i32, %c0_i32_0 : i32, i32
  }
  func.func @transform_4(%arg0: i32, %arg1: i32) -> (i32, i32, i32) {
    %c0_i32 = arith.constant 0 : i32
    %c0_i32_0 = arith.constant 0 : i32
    return %arg0, %c0_i32, %arg1 : i32, i32, i32
  }
}

</mosaic_0001>

<bundles_post_ra>
// kernel: tpu_custom_call.1
= control target key start
LH: loop header
LB: loop body
LE: loop exit
PB: predicated region body
PF: predicated region fallthrough
CT: control target
= control target key end

     0   :  { %9 = vsyncpa [#allocation3], 0  ;;  %s819_s0 = inlined_call_operand.hbm [shape: bf16[2,48,256], index: 0, kind: input, shape index: {}]   ;;  %s820_s1 = inlined_call_operand.vmem [shape: bf16[8,48], index: 1, kind: input, shape index: {}]   ;;  %s821_s2 = inlined_call_operand.vmem [shape: f32[8,1], index: 2, kind: input, shape index: {}]   ;;  %s822_s3 = inlined_call_operand.vmem [shape: f32[8,1], index: 3, kind: input, shape index: {}]   ;;  %s823_s4 = inlined_call_operand.hbm [shape: bf16[2,8,256], index: 4, kind: output, shape index: {}]  }
   0x1   :  { %11 = vsyncpa [#allocation3 + $0x1], 0 }
   0x2   :  { %12 = vsyncpa [#allocation4], 0 }
   0x3   :  { %14 = vsyncpa [#allocation4 + $0x1], 0  ;;  %s689_s15 = smov 0   ;;  %s691_s16 = smov 0  }
   0x4   :  { %s693_s17 = smov 0   ;;  %s695_s18 = smov 0  }
   0x5   :  { %s697_s19 = smov 0   ;;  %s699_s20 = smov 0  }
   0x6 LB: > { %s433_s21 = sadd.s32 4294967295, %s659_s20   ;;  %s434_s22 = sadd.s32 4294967294, %s659_s20   ;;  %s659_s20 = sphi %s699_s20, %s20_s20   ;;  %s655_s19 = sphi %s697_s19, %s832_s19   ;;  %s651_s18 = sphi %s695_s18, %s831_s18   ;;  %s647_s17 = sphi %s693_s17, %s830_s17   ;;  %s643_s16 = sphi %s691_s16, %s829_s16   ;;  %s639_s15 = sphi %s689_s15, %s828_s15  }
   0x7   : > { %s32_s23 = sadd.s32 1, %s655_s19  ;;  %s41_s24 = sadd.s32 1, %s647_s17 }
   0x8   : > { %p34_p0 = scmp.ge.s32.totalorder %s32_s23, 2  ;;  %p48_p1 = scmp.ne.s32.totalorder %s647_s17, %s643_s16 }
   0x9   : > { %p49_p2 = scmp.eq.s32.totalorder %s659_s20, 0  ;;  %p54_p3 = scmp.ne.s32.totalorder %s643_s16, %s639_s15 }
   0xa   : > { %s834_s23 = smov (%p34_p0, %s32_s23), 0  ;;  %p55_p5 = scmp.eq.s32.totalorder %s433_s21, 0 }
   0xb   : > { %p730_p4 = por %p49_p2, %p48_p1  ;;  %s36_s26 = ssub.s32 %s655_s19, %s834_s23 }
   0xc   : > { %p143_p6 = scmp.eq.s32.totalorder %s433_s21, 1  ;;  %p39_p7 = scmp.eq.s32.totalorder %s36_s26, 0 }
   0xd   : > { %p736_p8 = por %p55_p5, %p54_p3  ;;  %p149_p10 = scmp.eq.s32.totalorder %s434_s22, 1 }
   0xe   : > { %p740_p9 = por %p143_p6, %p48_p1  ;;  %p436_p12 = scmp.ge.s32.totalorder %s659_s20, 2 }
   0xf   : > { %s745_s29 = scalar_select %p39_p7, %s647_s17, %s41_s24  }
  0x10   : > { %p747_p11 = por %p149_p10, %p54_p3  ;;  %p493_p13 = scmp.lt.s32.totalorder %s659_s20, 2 }
  0x11   : > { %s178_s5 = sand.u32 1, %s647_s17   ;;  %s479_s7 = smul.u32 48, %s655_s19 }
  0x12   : > { %s478_s6 = smul.u32 48, %s178_s5  ;;  %p486_p0 = pnand %p493_p13, %p730_p4 }
  0x13   : > { %s189_s10 = scalar_lea.hbm %s819_s0, %s479_s7  ;;  %p438_p1 = scmp.ge.s32.totalorder %s659_s20, 1 }
  0x14   : > { %s182_s11 = scalar_lea.vmem [#allocation2], %s478_s6  ;;  %s190_s13 = sshll.u32 %s189_s10, 4  ;;  %s191_s13 = int_to_ptr.hbm [resolvable:$true] %s190_s13 }
  0x15   : > { %s192_s12 = sshll.u32 %s182_s11, 4  ;;  %s179_s14 = scalar_lea.sflag [#allocation3], %s178_s5  ;;  %s193_s12 = int_to_ptr.vmem [resolvable:$true] %s192_s12 }
  0x16   : > { %s661_s21 = smov 128   ;;  %s662_s22 = smov 8  }
  0x17   : > { %488 = dma.hbm_to_vmem [thread:$0]  (!%p486_p0), %s191_s13, 768, %s193_s12, %s179_s14, %s661_s21, %s661_s21, %s662_s22  }
  0x18   : > { %p200_p2 = scmp.lt.s32.totalorder %s659_s20, 3 }
  0x1a   : > { %p201_p3 = pnand %p438_p1, %p200_p2 }
  0x1b   : > { %s763_s24 = sand.u32 (!%p201_p3), 1, %s643_s16  }
  0x1c   : > { %204 = sbr.rel (%p201_p3) target bundleno = 187 (0xbb), region = 36  ;;  %s207_s26 = scalar_lea.sflag (!%p201_p3), [#allocation3], %s763_s24 }
  0x1d   : > { %s480_s25 = smul.u32 (!%p201_p3), 48, %s763_s24 }
  0x1f   : > { %s210_s6 = scalar_lea.vmem (!%p201_p3), [#allocation2], %s480_s25 }
  0x21   : > { %630 = dma.done.wait (%p736_p8), %s207_s26, 768  }
  0x22   : > { %632 = vsyncadd (%p736_p8), %s207_s26, 4294966528  ;;  %v663_v0 = vmov 0   ;;  %v458_v1 = vld [vmem:[%s210_s6 + $0x20] sm:$0xf]  ;;  %v476_v2 = vld [vmem:[%s210_s6 + $0x24] sm:$0xf0] }
  0x23   : > { %546 = vset.pattern.permute.xlu0 %v663_v0  ;;  %v475_v3 = vld [vmem:[%s210_s6 + $0x24] sm:$0xf]  ;;  %v459_v4 = vor.u32 %v476_v2, %v458_v1  ;;  %v460_v5 = vld [vmem:[%s210_s6 + $0x28] sm:$0xf0]  ;;  %v450_v6 = vld [vmem:[%s210_s6 + $0x10] sm:$0xf] }
  0x24   : > { %v474_v7 = vld [vmem:[%s210_s6 + $0x14] sm:$0xf0]  ;;  %v463_v8 = vor.u32 %v475_v3, %v460_v5  ;;  %v473_v9 = vld [vmem:[%s210_s6 + $0x14] sm:$0xf]  ;;  %v452_v10 = vld [vmem:[%s210_s6 + $0x18] sm:$0xf0] }
  0x25   : > { %v306_v11 = vld [vmem:[%s821_s2] sm:$0xff]  ;;  %285 = vmatpush.bf16.msra.mxu0 %v459_v4  ;;  %v451_v12 = vor.u32 %v474_v7, %v450_v6  ;;  %v455_v13 = vor.u32 %v473_v9, %v452_v10  ;;  %v472_v15 = vld [vmem:[%s210_s6 + $0x4] sm:$0xf0]  ;;  %v444_v17 = vld [vmem:[%s210_s6 + $0x8] sm:$0xf0]  ;;  %vm276_vm0 = vcmask 392192  }
  0x26   : > { %309 = vperm.xlu0 %546, %v306_v11   ;;  %298 = vmatpush.bf16.msra.mxu1 %v463_v8  ;;  %v442_v14 = vld [vmem:[%s210_s6] sm:$0xf]  ;;  %v471_v16 = vld [vmem:[%s210_s6 + $0x4] sm:$0xf]  ;;  %s439_s11 = sshll.u32 %s763_s24, 3  ;;  %s477_s12 = sshll.u32 %s651_s18, 3 }
  0x27   : > { %v443_v18 = vor.u32 %v472_v15, %v442_v14  ;;  %v447_v19 = vor.u32 %v471_v16, %v444_v17  ;;  %v314_v20 = vld [vmem:[%s822_s3] sm:$0xff]  ;;  %s344_s21 = scalar_lea.hbm %s823_s4, %s477_s12  ;;  %s235_s22 = scalar_lea.vmem [#allocation5], %s439_s11 }
  0x28   : > { %v239_v21 = vld [vmem:[%s820_s1] sm:$0xf]  ;;  %s346_s25 = sshll.u32 %s235_s22, 4  ;;  %s348_s26 = sshll.u32 %s344_s21, 4  ;;  %s347_s25 = int_to_ptr.vmem [resolvable:$true] %s346_s25  ;;  %s349_s26 = int_to_ptr.hbm [resolvable:$true] %s348_s26 }
  0x29   : > { %286 = vmatpush.bf16.msra.mxu0 %v451_v12  ;;  %s331_s18 = scalar_lea.sflag [#allocation4], %s763_s24  ;;  %s591_s6 = sshra.s32 %s349_s26, 4  ;;  %s592_s6 = int_to_ptr.hbm [resolvable:$true] %s591_s6 }
  0x2a   : > { %299 = vmatpush.bf16.msra.mxu1 %v455_v13  ;;  %s593_s5 = scalar_lea.hbm %s592_s6, 8  ;;  %s597_s8 = scalar_lea.hbm %s823_s4, 16 }
  0x2b   : > { %p594_p4 = scmp.ne.s32.totalorder %s592_s6, %s593_s5  ;;  %p598_p7 = scmp.lt.s32.totalorder %s592_s6, %s823_s4 }
  0x2c   : > { %p599_p8 = scmp.lt.s32.totalorder %s597_s8, %s593_s5 }
  0x2d   : > { %287 = vmatpush.bf16.msra.mxu0 %v443_v18  ;;  %p595_p5 = pnand %p594_p4, %p740_p9 }
  0x2e   : > { %317 = vperm.xlu0 %546, %v314_v20   ;;  %300 = vmatpush.bf16.msra.mxu1 %v447_v19  ;;  %p600_p10 = por %p599_p8, %p598_p7 }
  0x2f   : > { %p596_p6 = pneg %p595_p5 }
  0x30   : > { %464 = vmatmul.msk.bf16.vlgmr.msra.gmra.mxu0 %vm276_vm0, %v239_v21 }
  0x31   : > { %465 = vmatmul.msk.bf16.vlgmr.msra.gmra.mxu1 %vm276_vm0, %v239_v21  ;;  %p601_p13 = pnand %p600_p10, %p596_p6 }
  0x98   : > { %v310_v22 = vpop.permute.xlu0 %309 }
  0xa0   : > { %v318_v26 = vpop.permute.xlu0 %317 }
  0xad   : > { %v289_v23 = vpop.f32.mrf.mxu0 }
  0xae   : > { %v312_v24 = vmul.f32 %v310_v22, %v289_v23  ;;  %v302_v25 = vpop.f32.mrf.mxu1 }
  0xaf   : > { %v313_v27 = vmul.f32 %v310_v22, %v302_v25 }
  0xb0   : > { %v320_v28 = vadd.f32 %v318_v26, %v312_v24 }
  0xb1   : > { %v321_v29 = vadd.f32 %v318_v26, %v313_v27 }
  0xb2   : > { %vm322_vm1 = vcmp.ge.f32.partialorder %v320_v28, 0.0  ;;  %v324_v30 = vmul.f32 0.1, %v320_v28 }
  0xb3   : > { %vm323_vm2 = vcmp.ge.f32.partialorder %v321_v29, 0.0  ;;  %v325_v31 = vmul.f32 0.1, %v321_v29 }
  0xb4   : > { %v326_v32 = vsel %vm322_vm1, %v320_v28, %v324_v30 }
  0xb5   : > { %v327_v33 = vsel %vm323_vm2, %v321_v29, %v325_v31  ;;  %v291_v34 = vpop.f32.mrf.mxu0 }
  0xb6   : > { %v328_v35 = vpack.c.bf16 %v327_v33, %v326_v32  ;;  %v304_v36 = vpop.f32.mrf.mxu1 }
  0xb8   : > { %329 = vst [vmem:[%s235_s22] sm:$0xff] %v328_v35 }
  0xb9   : > { %604 = shalt.err (!%p601_p13)
}
  0xba   : > { %483 = dma.vmem_to_hbm [thread:$0]  (%p740_p9), %s347_s25, 128, %s349_s26, %s331_s18  }
  0xbb PF: > { %s360_s24 = sand.u32 1, %s639_s15   ;;  %p490_p0 = pnand %p436_p12, %p747_p11 }
  0xbc   : > { %s361_s11 = scalar_lea.sflag [#allocation4], %s360_s24 }
  0xbd   : > { %p491_p1 = pneg %p490_p0 }
  0xbf   : > { %634 = dma.done.wait (%p491_p1), %s361_s11, 128  }
  0xc0   : > { %636 = vsyncadd (%p491_p1), %s361_s11, 4294967168  ;;  %s20_s20 = sadd.s32 1, %s659_s20   ;;  %s828_s15 = smov %s643_s16 }
  0xc1   : > { %p17_p2 = scmp.ge.s32.totalorder %s20_s20, 4   ;;  %s829_s16 = smov %s647_s17 }
  0xc2   : > { %s830_s17 = smov %s745_s29  ;;  %s831_s18 = smov %s655_s19 }
  0xc3   : > { %s832_s19 = smov %s834_s23  ;;  %19 = sbr.rel (!%p17_p2) target bundleno = 6 (0x6), region = 81 }
  0xc8   :  { %367 = vsyncpa [#allocation3], 1 }
  0xc9   :  { %369 = vsyncpa [#allocation3 + $0x1], 1 }
  0xca   :  { %370 = vsyncpa [#allocation4], 1 }
  0xcb   :  { %372 = vsyncpa [#allocation4 + $0x1], 1 }

</bundles_post_ra>
